<compile_context>
chip_gen: v7x
topology: tpu7x:2x2x1
jax: 0.10.0
libtpu: 0.0.40
codegen_flags: <defaults>
</compile_context>

<pallas_src>
import functools

import jax
import jax.numpy as jnp
from jax.experimental import pallas as pl
from jax.experimental.pallas import tpu as pltpu


def _round_up(x, m):
    return ((x + m - 1) // m) * m


# ----------------------------------------------------------------------------
# Tile selection (weight-side tiles chosen once per head shape)
# ----------------------------------------------------------------------------
def _choose_head_tiles(D, C, *, max_tn=512, max_tk=1024, collapse_limit=2048,
                       budget_bytes=24 << 20, tm_hint=512):
    """Pick (tn, tk) for a (D, C) linear head.

    Collapses the j/k grid axes when C / D are small enough (so x and W each
    stream from HBM exactly once), then shrinks tiles until the steady-state
    double-buffered VMEM footprint fits a conservative budget that is safe on
    every generation (v5e 16 MiB default scoped / v7x 64 MiB physical).
    """
    Dp0 = _round_up(D, 128)
    Cp0 = _round_up(C, 128)
    tk = Dp0 if Dp0 <= collapse_limit else max_tk
    tn = Cp0 if Cp0 <= collapse_limit else max_tn

    def footprint(tn_, tk_):
        return (2 * tm_hint * tk_ * 2      # x tiles (bf16, double-buffered)
                + 2 * tk_ * tn_ * 2        # W tiles (bf16, double-buffered)
                + 2 * tm_hint * tn_ * 4    # out tiles (f32 worst case)
                + tm_hint * tn_ * 4        # f32 accumulator scratch
                + 2 * tn_ * 4)             # bias tiles

    while footprint(tn, tk) > budget_bytes and (tk > 512 or tn > 256):
        if tk >= tn and tk > 512:
            tk = max(512, _round_up(tk // 2, 128))
        elif tn > 256:
            tn = max(256, _round_up(tn // 2, 128))
        else:
            break
    return tn, tk


# ----------------------------------------------------------------------------
# Pallas kernels: tiled  logits = x @ W + b   (bf16 MXU inputs, f32 accum)
# ----------------------------------------------------------------------------
def _linear_head_kernel_single(x_ref, w_ref, b_ref, o_ref):
    # Single K step: no accumulator scratch, no pl.when, bias added once.
    acc = jnp.dot(x_ref[...].astype(jnp.bfloat16), w_ref[...],
                  preferred_element_type=jnp.float32)
    o_ref[...] = (acc + b_ref[...]).astype(o_ref.dtype)


def _linear_head_kernel_acc(x_ref, w_ref, b_ref, o_ref, acc_ref):
    # x_ref: (tm, tk)  w_ref: (tk, tn) bf16  b_ref: (1, tn) f32
    # o_ref: (tm, tn)  acc_ref: (tm, tn) f32 VMEM scratch
    k = pl.program_id(2)

    @pl.when(k == 0)
    def _():
        # Fold the bias into the accumulator init (bias added exactly once).
        acc_ref[...] = jnp.broadcast_to(b_ref[...], acc_ref.shape)

    acc_ref[...] += jnp.dot(x_ref[...].astype(jnp.bfloat16), w_ref[...],
                            preferred_element_type=jnp.float32)

    @pl.when(k == pl.num_programs(2) - 1)
    def _():
        # Store only once, in the epilogue; steady-state K loop stays MXU-only.
        o_ref[...] = acc_ref[...].astype(o_ref.dtype)


@functools.partial(
    jax.jit, static_argnames=("num_classes", "tn", "tk", "tm_max", "out_dtype"))
def linear_head_pallas(x2d, w_padded, b_padded, *, num_classes, tn, tk,
                       tm_max=512, out_dtype=jnp.float32):
    """x2d: (M, D), w_padded: (Dp, Cp) bf16, b_padded: (1, Cp) f32 -> (M, C).

    bf16 matmul inputs, f32 accumulation, bias added once in f32.
    """
    M, D = x2d.shape
    Dp, Cp = w_padded.shape
    assert Dp % tk == 0 and Cp % tn == 0

    # ---- M tiling (per-call; weight-side tiles were chosen in __init__) ----
    tm = min(tm_max, _round_up(M, 16))
    Mp = _round_up(M, tm)
    n_i = Mp // tm
    n_j = Cp // tn
    n_k = Dp // tk
    # Keep >=2 points on a parallel axis for v7x's 2 TensorCores when the
    # problem is big enough to be worth splitting.
    if n_i == 1 and n_j == 1 and Mp >= 512:
        tm = _round_up((Mp + 1) // 2, 16)
        Mp = 2 * tm
        n_i = 2

    # ---- x padding / dtype: pre-cast to bf16 only if the kernel re-reads x ----
    if n_j >= 2:
        x2d = x2d.astype(jnp.bfloat16)
    xb = jnp.pad(x2d, ((0, Mp - M), (0, Dp - D)))

    # ---- VMEM budget / explicit scoped limit (capped for v7x's 64 MiB) ----
    x_bytes = xb.dtype.itemsize
    out_bytes = jnp.dtype(out_dtype).itemsize
    foot = (2 * tm * tk * x_bytes + 2 * tk * tn * 2 + 2 * tm * tn * out_bytes
            + (tm * tn * 4 if n_k > 1 else 0) + 2 * tn * 4)
    vmem_limit = int(min(max(2 * foot, 32 << 20), 48 << 20))

    out_shape = jax.ShapeDtypeStruct((Mp, Cp), out_dtype)

    if n_k == 1:
        # Collapsed K axis: stream x and W once, no accumulator scratch.
        out = pl.pallas_call(
            _linear_head_kernel_single,
            out_shape=out_shape,
            grid_spec=pltpu.PrefetchScalarGridSpec(
                num_scalar_prefetch=0,
                grid=(n_i, n_j),
                in_specs=[
                    pl.BlockSpec((tm, tk), lambda i, j: (i, 0)),   # x tile
                    pl.BlockSpec((tk, tn), lambda i, j: (0, j)),   # W tile
                    pl.BlockSpec((1, tn), lambda i, j: (0, j)),    # bias tile
                ],
                out_specs=pl.BlockSpec((tm, tn), lambda i, j: (i, j)),
            ),
            compiler_params=pltpu.CompilerParams(
                dimension_semantics=("parallel", "parallel"),
                vmem_limit_bytes=vmem_limit,
            ),
        )(xb, w_padded, b_padded)
    else:
        out = pl.pallas_call(
            _linear_head_kernel_acc,
            out_shape=out_shape,
            grid_spec=pltpu.PrefetchScalarGridSpec(
                num_scalar_prefetch=0,
                grid=(n_i, n_j, n_k),
                in_specs=[
                    pl.BlockSpec((tm, tk), lambda i, j, k: (i, k)),   # x tile
                    pl.BlockSpec((tk, tn), lambda i, j, k: (k, j)),   # W tile
                    pl.BlockSpec((1, tn), lambda i, j, k: (0, j)),    # bias tile
                ],
                out_specs=pl.BlockSpec((tm, tn), lambda i, j, k: (i, j)),
                scratch_shapes=[pltpu.VMEM((tm, tn), jnp.float32)],
            ),
            compiler_params=pltpu.CompilerParams(
                # K (reduction) axis last and 'arbitrary'; M/C axes parallel so
                # the grid can be sharded across TensorCores (v7x megacore).
                dimension_semantics=("parallel", "parallel", "arbitrary"),
                vmem_limit_bytes=vmem_limit,
            ),
        )(xb, w_padded, b_padded)

    return out[:M, :num_classes]


# ----------------------------------------------------------------------------
# Python-side module equivalent
# ----------------------------------------------------------------------------
class LinearPallas:
    """JAX/Pallas analogue of the PyTorch `Linear` wrapper (scale=None path)."""

    # Below this many MACs the pallas_call launch / per-step overhead dominates
    # and XLA fusion of a tiny matmul is faster.
    _MIN_PALLAS_MACS = 1 << 20

    def __init__(self, in_dim, num_classes, freeze=False, key=None,
                 force_pallas=False, out_dtype=jnp.float32):
        if key is None:
            key = jax.random.PRNGKey(0)
        kw, kb = jax.random.split(key)
        # Deterministic parameter init (synthetic weights, not a checkpoint).
        self.w = (jax.random.normal(kw, (in_dim, num_classes), jnp.float32)
                  * (1.0 / jnp.sqrt(in_dim)))
        self.b = jax.random.normal(kb, (num_classes,), jnp.float32) * 0.01
        self.freeze = freeze
        self.force_pallas = force_pallas
        self.out_dtype = out_dtype

        # Weight-side tiling + pad/cast done ONCE (hoisted out of forward).
        self._tn, self._tk = _choose_head_tiles(in_dim, num_classes)
        Dp = _round_up(in_dim, self._tk)
        Cp = _round_up(num_classes, self._tn)
        self.w_padded = jnp.pad(self.w.astype(jnp.bfloat16),
                                ((0, Dp - in_dim), (0, Cp - num_classes)))
        self.b_padded = jnp.pad(self.b.astype(jnp.float32),
                                (0, Cp - num_classes)).reshape(1, Cp)

    def get_scale_output(self, x, pos=None, disjoint_views=False):
        # scale is None -> identity backbone: o = dict(x=x)
        return {"x": x}

    def __call__(self, x, pos=None, no_logits=False):
        # freeze -> no-grad backbone (stop_gradient is the JAX analogue)
        if self.freeze:
            o = jax.tree_util.tree_map(jax.lax.stop_gradient,
                                       self.get_scale_output(x, pos))
        else:
            o = self.get_scale_output(x, pos)

        feats = o["x"]  # (N, V, D)
        if no_logits:
            return {"x": feats}

        N, V, D = feats.shape
        C = self.w.shape[1]
        flat = feats.reshape(N * V, D)

        macs = (N * V) * D * C
        if self.force_pallas or macs >= self._MIN_PALLAS_MACS:
            logits = linear_head_pallas(
                flat, self.w_padded, self.b_padded,
                num_classes=C, tn=self._tn, tk=self._tk,
                out_dtype=self.out_dtype)
        else:
            # Tiny head: let XLA fuse the matmul (exact f32 path).
            logits = flat @ self.w + self.b

        logits = logits.reshape(N, V, -1)
        return {"x": feats, "logits": logits}


if __name__ == "__main__":
    key = jax.random.PRNGKey(0)
    kx, kparams = jax.random.split(key)

    N, V, D, C = 2, 4, 32, 16  # batch, views, feature dim, num classes
    x = jax.random.normal(kx, (N, V, D), jnp.float32)

    # force_pallas=True so the Pallas kernel is exercised even at demo sizes.
    model = LinearPallas(in_dim=D, num_classes=C, freeze=True, key=kparams,
                         force_pallas=True)
    out = model(x)
    logits = jax.block_until_ready(out["logits"])
    assert logits.shape == (N, V, C)

    # Cross-check against a plain-JAX reference with matching bf16-input /
    # f32-accumulation numerics.
    flat = x.reshape(N * V, D)
    ref_bf16 = jnp.dot(flat.astype(jnp.bfloat16), model.w.astype(jnp.bfloat16),
                       preferred_element_type=jnp.float32) + model.b
    ref_bf16 = ref_bf16.reshape(N, V, C)
    assert jnp.allclose(logits, ref_bf16, atol=1e-3, rtol=1e-3)

    # Looser sanity check against the exact f32 reference (bf16 inputs are an
    # intentional precision change vs the f32 PyTorch Linear).
    ref_f32 = (flat @ model.w + model.b).reshape(N, V, C)
    assert jnp.allclose(logits, ref_f32, atol=3e-2, rtol=3e-2)

    print("KERNEL_OK")
</pallas_src>

<mosaic_0001>
module attributes {stable_mosaic.version = 11 : i64} {
  func.func @_linear_head_kernel_single(%arg0: i32, %arg1: i32, %arg2: memref<16x128xf32, #tpu.memory_space<vmem>>, %arg3: memref<128x128xbf16, #tpu.memory_space<vmem>>, %arg4: memref<1x128xf32, #tpu.memory_space<vmem>>, %arg5: memref<16x128xf32, #tpu.memory_space<vmem>>) attributes {dimension_semantics = [#tpu.dimension_semantics<parallel>, #tpu.dimension_semantics<parallel>], iteration_bounds = array<i64: 1, 1>, scalar_prefetch = 0 : i64, scratch_operands = 0 : i64, tpu.core_type = #tpu.core_type<tc>, window_params = [{transform_indices = @transform_0, window_bounds = array<i64: 16, 128>}, {transform_indices = @transform_1, window_bounds = array<i64: 128, 128>}, {transform_indices = @transform_2, window_bounds = array<i64: 1, 128>}, {transform_indices = @transform_3, window_bounds = array<i64: 16, 128>}]} {
    %c0 = arith.constant 0 : index
    %c0_0 = arith.constant 0 : index
    %0 = vector.load %arg2[%c0, %c0_0] : memref<16x128xf32, #tpu.memory_space<vmem>>, vector<16x128xf32>
    %1 = arith.truncf %0 : vector<16x128xf32> to vector<16x128xbf16>
    %c0_1 = arith.constant 0 : index
    %c0_2 = arith.constant 0 : index
    %2 = vector.load %arg3[%c0_1, %c0_2] : memref<128x128xbf16, #tpu.memory_space<vmem>>, vector<128x128xbf16>
    %cst = arith.constant dense<0.000000e+00> : vector<16x128xf32>
    %3 = tpu.matmul %1, %2, %cst {dimension_numbers = #tpu.dot_dimension_numbers<[1], [0], [0], [1], [0, 0, 1, 1], [], []>} : vector<16x128xbf16>, vector<128x128xbf16>, vector<16x128xf32> -> vector<16x128xf32>
    %c0_3 = arith.constant 0 : index
    %c0_4 = arith.constant 0 : index
    %4 = vector.load %arg4[%c0_3, %c0_4] : memref<1x128xf32, #tpu.memory_space<vmem>>, vector<1x128xf32>
    %5 = vector.broadcast %4 : vector<1x128xf32> to vector<16x128xf32>
    %6 = arith.addf %3, %5 : vector<16x128xf32>
    %c0_5 = arith.constant 0 : index
    %c0_6 = arith.constant 0 : index
    %7 = vector.load %arg5[%c0_5, %c0_6] : memref<16x128xf32, #tpu.memory_space<vmem>>, vector<16x128xf32>
    tpu.vector_store %arg5[%c0_5, %c0_6], %6 {strides = array<i32>} : memref<16x128xf32, #tpu.memory_space<vmem>>, vector<16x128xf32>,
    return
  }
  func.func @transform_0(%arg0: i32, %arg1: i32) -> (i32, i32) {
    %c0_i32 = arith.constant 0 : i32
    %c0_i32_0 = arith.constant 0 : i32
    return %arg0, %c0_i32 : i32, i32
  }
  func.func @transform_1(%arg0: i32, %arg1: i32) -> (i32, i32) {
    %c0_i32 = arith.constant 0 : i32
    %c0_i32_0 = arith.constant 0 : i32
    return %c0_i32, %arg1 : i32, i32
  }
  func.func @transform_2(%arg0: i32, %arg1: i32) -> (i32, i32) {
    %c0_i32 = arith.constant 0 : i32
    %c0_i32_0 = arith.constant 0 : i32
    return %c0_i32, %arg1 : i32, i32
  }
  func.func @transform_3(%arg0: i32, %arg1: i32) -> (i32, i32) {
    %c0_i32 = arith.constant 0 : i32
    return %arg0, %arg1 : i32, i32
  }
}

</mosaic_0001>

<bundles_post_ra>
// kernel: linear_head_pallas.1
= control target key start
LH: loop header
LB: loop body
LE: loop exit
PB: predicated region body
PF: predicated region fallthrough
CT: control target
= control target key end

     0   :  { %8 = vsyncpa [#allocation3], 0  ;;  %s226_s12 = smov [#allocation2]   ;;  %s278_s0 = inlined_call_operand.vmem [shape: f32[16,128], index: 0, kind: input, shape index: {}]   ;;  %s279_s1 = inlined_call_operand.hbm [shape: bf16[128,128], index: 1, kind: input, shape index: {}]   ;;  %s280_s2 = inlined_call_operand.vmem [shape: f32[1,128], index: 2, kind: input, shape index: {}]   ;;  %s281_s3 = inlined_call_operand.vmem [shape: f32[16,128], index: 3, kind: output, shape index: {}]  }
   0x1   :  { %s16_s13 = sshll.u32 %s226_s12, 4  ;;  %s202_s16 = scalar_lea.hbm %s279_s1, 1024  ;;  %s17_s13 = int_to_ptr.vmem [resolvable:$true] %s16_s13 }
   0x2   :  { %p203_p0 = scmp.ne.s32.totalorder %s279_s1, %s202_s16  ;;  %p206_p1 = scmp.lt.u32.totalorder %s202_s16, %s279_s1 }
   0x4   :  { %p208_p2 = pnand %p206_p1, %p203_p0 }
   0x6   :  { %211 = shalt.err (!%p208_p2)
}
   0x7   :  { %s212_s21 = scalar_lea.vmem %s17_s13, 1024  ;;  %p217_p4 = scmp.lt.s32.totalorder %s17_s13, %s17_s13 }
   0x8   :  { %p213_p3 = scmp.ne.s32.totalorder %s17_s13, %s212_s21  ;;  %p218_p5 = scmp.lt.s32.totalorder %s212_s21, %s212_s21 }
   0xa   :  { %p219_p6 = por %p218_p5, %p217_p4 }
   0xc   :  { %p220_p7 = pnand %p219_p6, %p213_p3 }
   0xe   :  { %223 = shalt.err (!%p220_p7)
}
   0xf   :  { %s227_s22 = smov 64   ;;  %s228_s23 = smov 4  }
  0x10   :  { %22 = dma.hbm_to_vmem [thread:$0]  %s279_s1, 1024, %s17_s13, [#allocation3], %s227_s22, %s227_s22, %s228_s23  }
  0x11   :  { %224 = dma.done.wait [#allocation3], 1024  }
  0x12   :  { %225 = vsyncadd [#allocation3], 4294966272  ;;  %v229_v0 = vmov 0.0   ;;  %vm230_vm0 = vmmov 0   ;;  %v194_v1 = vld [vmem:[#allocation2] sm:$0xff]   ;;  %v195_v2 = vld [vmem:[#allocation2 + $0x8] sm:$0xff]  }
  0x13   :  { %169 = vmatprep.subr.bf16.mxu0 %v229_v0  ;;  %185 = vmatprep.mubr.msk.bf16.mxu0 %vm230_vm0, %v229_v0  ;;  %v196_v3 = vld [vmem:[#allocation2 + $0x10] sm:$0xff]   ;;  %v197_v4 = vld [vmem:[#allocation2 + $0x18] sm:$0xff]   ;;  %v198_v5 = vld [vmem:[#allocation2 + $0x20] sm:$0xff]  }
  0x14   :  { %170 = vmatpush3.bf16.msra.mxu0 %v194_v1  ;;  %v199_v6 = vld [vmem:[#allocation2 + $0x28] sm:$0xff]   ;;  %v200_v7 = vld [vmem:[#allocation2 + $0x30] sm:$0xff]   ;;  %v201_v8 = vld [vmem:[#allocation2 + $0x38] sm:$0xff]  }
  0x15   :  { %171 = vmatprep.subr.bf16.mxu0 %v229_v0  ;;  %v29_v9 = vld [vmem:[%s278_s0] sm:$0xff]  ;;  %v30_v10 = vld [vmem:[%s278_s0 + $0x8] sm:$0xff] }
  0x16   :  { %v31_v11 = vpack.c.bf16 %v30_v10, %v29_v9  ;;  %v151_v12 = vld [vmem:[%s280_s2] ss:$0 sm:$0xff] }
  0x18   :  { %172 = vmatpush3.bf16.msra.mxu0 %v195_v2 }
  0x19   :  { %173 = vmatprep.subr.bf16.mxu0 %v229_v0 }
  0x1c   :  { %174 = vmatpush3.bf16.msra.mxu0 %v196_v3 }
  0x1d   :  { %175 = vmatprep.subr.bf16.mxu0 %v229_v0 }
  0x20   :  { %176 = vmatpush3.bf16.msra.mxu0 %v197_v4 }
  0x21   :  { %177 = vmatprep.subr.bf16.mxu0 %v229_v0 }
  0x24   :  { %178 = vmatpush3.bf16.msra.mxu0 %v198_v5 }
  0x25   :  { %179 = vmatprep.subr.bf16.mxu0 %v229_v0 }
  0x28   :  { %180 = vmatpush3.bf16.msra.mxu0 %v199_v6 }
  0x29   :  { %181 = vmatprep.subr.bf16.mxu0 %v229_v0 }
  0x2c   :  { %182 = vmatpush3.bf16.msra.mxu0 %v200_v7 }
  0x2d   :  { %183 = vmatprep.subr.bf16.mxu0 %v229_v0 }
  0x30   :  { %184 = vmatpush3.bf16.msra.mxu0 %v201_v8 }
  0x33   :  { %186 = vmatmul.mubr.bf16.vlgmr.msra.gmra.mrb[0].mxu0 %v31_v11 }
 0x106   :  { %v137_v13 = vpop.f32.mrb[0].mxu0 }
 0x107   :  { %v138_v14 = vadd.f32 %v151_v12, %v137_v13  ;;  %v187_v15 = vpop.f32.mrb[1].mxu0 }
 0x108   :  { %v140_v16 = vpop.f32.mrb[2].mxu0 }
 0x109   :  { %144 = vst [vmem:[%s281_s3] sm:$0xff] %v138_v14  ;;  %v141_v17 = vadd.f32 %v151_v12, %v140_v16  ;;  %v188_v18 = vpop.f32.mrb[3].mxu0 }
 0x10b   :  { %145 = vst [vmem:[%s281_s3 + $0x8] sm:$0xff] %v141_v17 }
 0x10c   :  { %150 = vsyncpa [#allocation3], 1 }

</bundles_post_ra>
